<compile_context>
chip_gen: v7x
topology: tpu7x:2x2x1
jax: 0.10.0
libtpu: 0.0.40
codegen_flags: <defaults>
</compile_context>

<pallas_src>
import math
import functools

import jax
import jax.numpy as jnp
from jax import lax
from jax.experimental import pallas as pl


def _attn_head_kernel(x_ref, w_qkv_ref, b_qkv_ref, bias_ref, o_ref, *, head_dim):
    B, T, E = x_ref.shape
    H = head_dim

    # Fused QKV projection: one MXU push, (B*T, E) @ (E, 3H) + (1, 3H).
    x2 = x_ref[...].reshape(B * T, E)
    qkv = jnp.dot(x2, w_qkv_ref[...], preferred_element_type=jnp.float32)
    qkv = qkv + b_qkv_ref[...]

    q = qkv[:, 0 * H:1 * H].reshape(B, T, H)
    k = qkv[:, 1 * H:2 * H].reshape(B, T, H)
    v = qkv[:, 2 * H:3 * H].reshape(B, T, H)

    # scores[b, t, s] = q[b, t, :] . k[b, s, :]   (contract last axes, no k.T)
    scores = lax.dot_general(
        q, k, dimension_numbers=(((2,), (2,)), ((0,), (0,))),
        preferred_element_type=jnp.float32)
    scores = scores * (1.0 / math.sqrt(H)) + bias_ref[...][None]

    # numerically-stable softmax along the key axis
    m = jnp.max(scores, axis=-1, keepdims=True)
    e = jnp.exp(scores - m)
    attn = e * pl.reciprocal(jnp.sum(e, axis=-1, keepdims=True), approx=True)

    # TODO(synk): F.dropout on attn is identity at inference / p=0.0; skipped.

    out = lax.dot_general(
        attn, v, dimension_numbers=(((2,), (1,)), ((0,), (0,))),
        preferred_element_type=jnp.float32)
    o_ref[...] = out.astype(o_ref.dtype)


def attention_head(x, wq, bq, wk, bk, wv, bv, mask=None):
    """x: (B, T, E) f32. wq/wk/wv: (H, E) torch-Linear weights. b*: (H,). mask: (T, T) or None."""
    B, T, E = x.shape
    H = wq.shape[0]

    # Fuse the three projections: x @ [Wq^T | Wk^T | Wv^T] + [bq | bk | bv].
    w_qkv = jnp.concatenate([wq.T, wk.T, wv.T], axis=1).astype(jnp.float32)   # (E, 3H)
    b_qkv = jnp.concatenate([bq, bk, bv]).reshape(1, 3 * H).astype(jnp.float32)

    # masked_fill(mask == 0, -inf)  ->  additive bias with a large finite
    # negative: exp underflows to exactly 0 and fully-masked rows never NaN.
    if mask is None:
        bias = jnp.zeros((T, T), jnp.float32)
    else:
        bias = jnp.where(mask == 0, jnp.float32(-1e30), jnp.float32(0.0))

    kernel = functools.partial(_attn_head_kernel, head_dim=H)

    # Single kernel invocation, no grid: every operand fits whole in VMEM, so
    # any per-grid-step overhead would dominate at these sizes.
    out = pl.pallas_call(
        kernel,
        out_shape=jax.ShapeDtypeStruct((B, T, H), x.dtype),
    )(x, w_qkv, b_qkv, bias)
    return out


def reference(x, wq, bq, wk, bk, wv, bv, mask):
    q = x @ wq.T + bq
    k = x @ wk.T + bk
    v = x @ wv.T + bv
    scores = jnp.einsum("btd,bsd->bts", q, k) / math.sqrt(q.shape[-1])
    scores = jnp.where(mask[None] == 0, -jnp.inf, scores)
    attn = jax.nn.softmax(scores, axis=-1)
    return jnp.einsum("bts,bsd->btd", attn, v)


if __name__ == "__main__":
    # config: n_embd=32, n_head=4 -> head_dim=8 ; batch=2, seq=8 ; dropout=0.0
    B, T, E, n_head = 2, 8, 32, 4
    H = E // n_head

    key = jax.random.PRNGKey(0)
    kx, kq, kk, kv, kbq, kbk, kbv = jax.random.split(key, 7)

    x = jax.random.normal(kx, (B, T, E), dtype=jnp.float32)
    # nn.Linear(n_embd, head_dim): weight (H, E), bias (H,)
    bound = 1.0 / math.sqrt(E)
    wq = jax.random.uniform(kq, (H, E), jnp.float32, -bound, bound)
    wk = jax.random.uniform(kk, (H, E), jnp.float32, -bound, bound)
    wv = jax.random.uniform(kv, (H, E), jnp.float32, -bound, bound)
    bq = jax.random.uniform(kbq, (H,), jnp.float32, -bound, bound)
    bk = jax.random.uniform(kbk, (H,), jnp.float32, -bound, bound)
    bv = jax.random.uniform(kbv, (H,), jnp.float32, -bound, bound)

    # causal mask (T, T): 1 where attending is allowed, 0 elsewhere
    mask = jnp.tril(jnp.ones((T, T), dtype=jnp.int32))

    out = attention_head(x, wq, bq, wk, bk, wv, bv, mask)
    out = jax.block_until_ready(out)

    ref = reference(x, wq, bq, wk, bk, wv, bv, mask)
    assert out.shape == (B, T, H)
    # Tolerance loosened slightly for pl.reciprocal(approx=True) in the softmax.
    err = float(jnp.max(jnp.abs(out - ref)))
    assert jnp.allclose(out, ref, atol=2e-3, rtol=2e-3), err

    print("KERNEL_OK")
</pallas_src>

<mosaic_0001>
module attributes {stable_mosaic.version = 11 : i64} {
  func.func @_attn_head_kernel(%arg0: memref<2x8x32xf32, #tpu.memory_space<vmem>>, %arg1: memref<32x24xf32, #tpu.memory_space<vmem>>, %arg2: memref<1x24xf32, #tpu.memory_space<vmem>>, %arg3: memref<8x8xf32, #tpu.memory_space<vmem>>, %arg4: memref<2x8x8xf32, #tpu.memory_space<vmem>>) attributes {dimension_semantics = [], scalar_prefetch = 0 : i64, scratch_operands = 0 : i64, tpu.core_type = #tpu.core_type<tc>} {
    %c0 = arith.constant 0 : index
    %c0_0 = arith.constant 0 : index
    %c0_1 = arith.constant 0 : index
    %0 = vector.load %arg0[%c0, %c0_0, %c0_1] : memref<2x8x32xf32, #tpu.memory_space<vmem>>, vector<2x8x32xf32>
    %1 = vector.shape_cast %0 : vector<2x8x32xf32> to vector<16x32xf32>
    %c0_2 = arith.constant 0 : index
    %c0_3 = arith.constant 0 : index
    %2 = vector.load %arg1[%c0_2, %c0_3] : memref<32x24xf32, #tpu.memory_space<vmem>>, vector<32x24xf32>
    %cst = arith.constant dense<0.000000e+00> : vector<16x24xf32>
    %3 = tpu.matmul %1, %2, %cst {dimension_numbers = #tpu.dot_dimension_numbers<[1], [0], [0], [1], [0, 0, 1, 1], [], []>} : vector<16x32xf32>, vector<32x24xf32>, vector<16x24xf32> -> vector<16x24xf32>
    %c0_4 = arith.constant 0 : index
    %c0_5 = arith.constant 0 : index
    %4 = vector.load %arg2[%c0_4, %c0_5] : memref<1x24xf32, #tpu.memory_space<vmem>>, vector<1x24xf32>
    %5 = vector.broadcast %4 : vector<1x24xf32> to vector<16x24xf32>
    %6 = arith.addf %3, %5 : vector<16x24xf32>
    %7 = vector.extract_strided_slice %6 {offsets = [0, 0], sizes = [16, 8], strides = [1, 1]} : vector<16x24xf32> to vector<16x8xf32>
    %8 = vector.shape_cast %7 : vector<16x8xf32> to vector<2x8x8xf32>
    %9 = vector.extract_strided_slice %6 {offsets = [0, 8], sizes = [16, 8], strides = [1, 1]} : vector<16x24xf32> to vector<16x8xf32>
    %10 = vector.shape_cast %9 : vector<16x8xf32> to vector<2x8x8xf32>
    %11 = vector.extract_strided_slice %6 {offsets = [0, 16], sizes = [16, 8], strides = [1, 1]} : vector<16x24xf32> to vector<16x8xf32>
    %12 = vector.shape_cast %11 : vector<16x8xf32> to vector<2x8x8xf32>
    %cst_6 = arith.constant dense<0.000000e+00> : vector<2x8x8xf32>
    %13 = tpu.matmul %8, %10, %cst_6 {dimension_numbers = #tpu.dot_dimension_numbers<[2], [2], [1], [1], [0, 0, 0, 1, 1, 1], [0], [0]>} : vector<2x8x8xf32>, vector<2x8x8xf32>, vector<2x8x8xf32> -> vector<2x8x8xf32>
    %cst_7 = arith.constant 0.353553385 : f32
    %14 = vector.broadcast %cst_7 : f32 to vector<2x8x8xf32>
    %15 = arith.mulf %13, %14 : vector<2x8x8xf32>
    %c0_8 = arith.constant 0 : index
    %c0_9 = arith.constant 0 : index
    %16 = vector.load %arg3[%c0_8, %c0_9] : memref<8x8xf32, #tpu.memory_space<vmem>>, vector<8x8xf32>
    %17 = vector.shape_cast %16 : vector<8x8xf32> to vector<1x8x8xf32>
    %18 = vector.broadcast %17 : vector<1x8x8xf32> to vector<2x8x8xf32>
    %19 = arith.addf %15, %18 : vector<2x8x8xf32>
    %cst_10 = arith.constant dense<0xFF800000> : vector<2x8xf32>
    %20 = vector.multi_reduction <maximumf>, %19, %cst_10 [2] : vector<2x8x8xf32> to vector<2x8xf32>
    %21 = vector.shape_cast %20 : vector<2x8xf32> to vector<2x8x1xf32>
    %22 = vector.broadcast %21 : vector<2x8x1xf32> to vector<2x8x8xf32>
    %23 = arith.subf %19, %22 : vector<2x8x8xf32>
    %24 = math.exp %23 : vector<2x8x8xf32>
    %cst_11 = arith.constant dense<0.000000e+00> : vector<2x8xf32>
    %25 = vector.multi_reduction <add>, %24, %cst_11 [2] : vector<2x8x8xf32> to vector<2x8xf32>
    %26 = vector.shape_cast %25 : vector<2x8xf32> to vector<2x8x1xf32>
    %27 = tpu.reciprocal %26 {approx = true} : vector<2x8x1xf32> -> vector<2x8x1xf32>
    %28 = vector.broadcast %27 : vector<2x8x1xf32> to vector<2x8x8xf32>
    %29 = arith.mulf %24, %28 : vector<2x8x8xf32>
    %cst_12 = arith.constant dense<0.000000e+00> : vector<2x8x8xf32>
    %30 = tpu.matmul %29, %12, %cst_12 {dimension_numbers = #tpu.dot_dimension_numbers<[2], [1], [1], [2], [0, 0, 0, 1, 1, 2], [0], [0]>} : vector<2x8x8xf32>, vector<2x8x8xf32>, vector<2x8x8xf32> -> vector<2x8x8xf32>
    %c0_13 = arith.constant 0 : index
    %c0_14 = arith.constant 0 : index
    %c0_15 = arith.constant 0 : index
    %31 = vector.load %arg4[%c0_13, %c0_14, %c0_15] : memref<2x8x8xf32, #tpu.memory_space<vmem>>, vector<2x8x8xf32>
    tpu.vector_store %arg4[%c0_13, %c0_14, %c0_15], %30 {strides = array<i32>} : memref<2x8x8xf32, #tpu.memory_space<vmem>>, vector<2x8x8xf32>,
    return
  }
}

</mosaic_0001>

<bundles_post_ra>
// kernel: tpu_custom_call.1
= control target key start
LH: loop header
LB: loop body
LE: loop exit
PB: predicated region body
PF: predicated region fallthrough
CT: control target
= control target key end

     0   :  { %vm31_vm0 = vcmask 261120   ;;  %s650_s0 = inlined_call_operand.vmem [shape: f32[2,8,32], index: 0, kind: input, shape index: {}]   ;;  %s651_s1 = inlined_call_operand.vmem [shape: f32[32,24], index: 1, kind: input, shape index: {}]   ;;  %s652_s2 = inlined_call_operand.vmem [shape: f32[1,24], index: 2, kind: input, shape index: {}]   ;;  %s653_s3 = inlined_call_operand.vmem [shape: f32[8,8], index: 3, kind: input, shape index: {}]   ;;  %s654_s4 = inlined_call_operand.hbm [shape: f32[2,8,8], index: 4, kind: output, shape index: {}]  }
   0x1   :  { %v20_v0 = vld [vmem:[%s651_s1] sm:$0xff]  ;;  %v21_v1 = vld [vmem:[%s651_s1 + $0x8] sm:$0xff]  ;;  %v22_v2 = vld [vmem:[%s651_s1 + $0x10] sm:$0xff] }
   0x2   :  { %v519_v3 = vpack.c.bf16 %v21_v1, %v20_v0  ;;  %v23_v4 = vld [vmem:[%s651_s1 + $0x18] sm:$0xff]  ;;  %v18_v5 = vld [vmem:[%s650_s0] sm:$0xff] }
   0x3   :  { %v523_v6 = vpack.c.bf16 %v23_v4, %v22_v2  ;;  %496 = vmatprep.mubr.msk.f32.mxu0 %vm31_vm0, %v18_v5 }
   0x4   :  { %9 = vsyncpa [#allocation3], 0  ;;  %520 = vmatprep.subr.bf16.mxu0 %v519_v3  ;;  %v19_v7 = vld [vmem:[%s650_s0 + $0x8] sm:$0xff]  ;;  %v566_v8 = vmov 0.0   ;;  %vm567_vm1 = vmmov 0   ;;  %s568_s28 = smov 120  }
   0x5   :  { %522 = vmatpush3.bf16.msra.mxu0 %v519_v3  ;;  %499 = vmatprep.subr.mxu1 %v566_v8  ;;  %v465_v9 = vld [vmem:[%s652_s2] ss:$0 sm:$0xff]  ;;  %vm116_vm2 = vcmask 64512   ;;  %s569_s29 = smov 112  }
   0x6   :  { %524 = vmatprep.subr.bf16.mxu0 %v523_v6  ;;  %501 = vmatprep.mubr.msk.f32.mxu1 %vm567_vm1, %v566_v8  ;;  %v270_v17 = vld [vmem:[%s653_s3] sm:$0xff]  ;;  %s570_s3 = smov [#allocation2]  }
   0x7   :  { %s454_s30 = sshll.u32 %s570_s3, 4  ;;  %s455_s30 = int_to_ptr.vmem [resolvable:$true] %s454_s30 }
   0x8   :  { %s542_s5 = scalar_lea.vmem %s455_s30, 256  ;;  %p547_p1 = scmp.lt.s32.totalorder %s455_s30, %s455_s30 }
   0x9   :  { %526 = vmatpush3.bf16.msra.mxu0 %v523_v6  ;;  %p543_p0 = scmp.ne.s32.totalorder %s455_s30, %s542_s5  ;;  %p548_p2 = scmp.lt.s32.totalorder %s542_s5, %s542_s5 }
   0xa   :  { %509 = vmatprep.subr.mxu0 %v566_v8 }
   0xb   :  { %p549_p3 = por %p548_p2, %p547_p1 }
   0xc   :  { %497 = vmatmul.mubr.msk.f32.vlgmr.msra.gmra.mrb[0].mxu0 %vm31_vm0, %v19_v7 }
   0xd   :  { %511 = vmatprep.mubr.msk.f32.mxu0 %vm567_vm1, %v566_v8  ;;  %p550_p4 = pnand %p549_p3, %p543_p0 }
  0xdf   :  { %v498_v10 = vpop.f32.mrb[0].mxu0 }
  0xe0   :  { %v104_v11 = vpop.f32.mrb[1].mxu0  ;;  %v110_v13 = vadd.f32 %v498_v10, %v465_v9 }
  0xe1   :  { %v105_v12 = vadd.f32 %v465_v9, %v104_v11 }
  0xe3   :  { %114 = vrot.lane.b32.xlu0 %v105_v12, %s568_s28 }
  0xe7   :  { %192 = vrot.lane.b32.xlu0 %v110_v13, %s568_s28 }
 0x155   :  { %v115_v14 = vpop.permute.xlu0 %114 }
 0x156   :  { %500 = vmatpush3.xpose.msk.msra.mxu1 %vm116_vm2, %v115_v14 }
 0x157   :  { %504 = vmatprep.subr.mxu1 %v566_v8 }
 0x159   :  { %502 = vmatmul.mubr.msk.f32.vlgmr.msra.gmra.mrb[0].mxu1 %vm116_vm2, %v105_v12  ;;  %v193_v15 = vpop.permute.xlu0 %192 }
 0x15a   :  { %505 = vmatpush3.xpose.msk.msra.mxu1 %vm116_vm2, %v193_v15  ;;  %506 = vmatprep.mubr.msk.f32.mxu1 %vm567_vm1, %v566_v8 }
 0x15b   :  { %514 = vmatprep.subr.mxu1 %v566_v8 }
 0x15d   :  { %507 = vmatmul.mubr.msk.f32.vlgmr.msra.gmra.mrb[2].mxu1 %vm116_vm2, %v110_v13 }
 0x15e   :  { %516 = vmatprep.mubr.msk.f32.mxu1 %vm567_vm1, %v566_v8 }
 0x22c   :  { %v187_v16 = vpop.f32.mrb[0].mxu1 }
 0x22d   :  { %v268_v18 = vmul.f32 0.35355338, %v187_v16  ;;  %v503_v19 = vpop.f32.mrb[1].mxu1 }
 0x22f   :  { %v271_v20 = vadd.f32 %v270_v17, %v268_v18 }
 0x230   :  { %v264_v21 = vpop.f32.mrb[2].mxu1 }
 0x231   :  { %v269_v22 = vmul.f32 0.35355338, %v264_v21  ;;  %v508_v23 = vpop.f32.mrb[3].mxu1  ;;  %v273_v24 = vsel %vm116_vm2, %v271_v20, -inf }
 0x232   :  { %274 = vmax.xlane.f32.xlu1 %v273_v24 }
 0x233   :  { %v272_v25 = vadd.f32 %v270_v17, %v269_v22 }
 0x235   :  { %v276_v26 = vsel %vm116_vm2, %v272_v25, -inf }
 0x236   :  { %277 = vmax.xlane.f32.xlu1 %v276_v26 }
 0x247   :  { %295 = vrot.lane.b32.xlu1 %v105_v12, %s569_s29 }
 0x2bf   :  { %v275_v27 = vpop.xlane.xlu1 %274 }
 0x2c0   :  { %v279_v28 = vsub.f32 %v271_v20, %v275_v27 }
 0x2c2   :  { %v281_v29 = vmul.f32 1.442695, %v279_v28 }
 0x2c3   :  { %v278_v30 = vpop.xlane.xlu1 %277 }
 0x2c4   :  { %534 = vpow2.f32 %v281_v29  ;;  %v280_v31 = vsub.f32 %v272_v25, %v278_v30 }
 0x2c6   :  { %v283_v32 = vmul.f32 1.442695, %v280_v31 }
 0x2c7   :  { %v296_v33 = vpop.permute.xlu1 %295 }
 0x2c8   :  { %536 = vpow2.f32 %v283_v32  ;;  %510 = vmatpush3.msra.mxu0 %v296_v33 }
 0x2ce   :  { %v535_v34 = vpop.eup %534 }
 0x2cf   :  { %v285_v35 = vsel %vm116_vm2, %v535_v34, 0.0 }
 0x2d0   :  { %286 = vadd.xlane.f32.xlu0 %v285_v35 }
 0x2d2   :  { %v537_v36 = vpop.eup %536 }
 0x2d3   :  { %v288_v37 = vsel %vm116_vm2, %v537_v36, 0.0 }
 0x2d4   :  { %289 = vadd.xlane.f32.xlu1 %v288_v37 }
 0x2e5   :  { %371 = vrot.lane.b32.xlu1 %v110_v13, %s569_s29 }
 0x35d   :  { %v287_v38 = vpop.xlane.xlu0 %286 }
 0x35e   :  { %538 = vrcp.f32 %v287_v38 }
 0x361   :  { %v290_v39 = vpop.xlane.xlu1 %289 }
 0x362   :  { %540 = vrcp.f32 %v290_v39 }
 0x365   :  { %v372_v40 = vpop.permute.xlu1 %371 }
 0x366   :  { %515 = vmatpush3.msra.mxu1 %v372_v40 }
 0x368   :  { %v539_v41 = vpop.eup %538 }
 0x369   :  { %v293_v42 = vmul.f32 %v539_v41, %v535_v34 }
 0x36b   :  { %512 = vmatmul.mubr.msk.f32.vlgmr.msra.gmra.mrb[2].mxu0 %vm116_vm2, %v293_v42 }
 0x36c   :  { %v541_v43 = vpop.eup %540 }
 0x36d   :  { %v294_v44 = vmul.f32 %v541_v43, %v537_v36 }
 0x36f   :  { %517 = vmatmul.mubr.msk.f32.vlgmr.msra.gmra.mrb[4].mxu1 %vm116_vm2, %v294_v44 }
 0x43e   :  { %v367_v45 = vpop.f32.mrb[2].mxu0 }
 0x43f   :  { %447 = vst.msk [vmem:[#allocation2] sm:$0xff] %vm116_vm2, %v367_v45  ;;  %v513_v46 = vpop.f32.mrb[3].mxu0 }
 0x442   :  { %v443_v47 = vpop.f32.mrb[4].mxu1 }
 0x443   :  { %448 = vst.msk [vmem:[#allocation2 + $0x8] sm:$0xff] %vm116_vm2, %v443_v47  ;;  %v518_v48 = vpop.f32.mrb[5].mxu1 }
 0x444   :  { %553 = shalt.err (!%p550_p4)
}
 0x445   :  { %s554_s8 = scalar_lea.hbm %s654_s4, 256 }
 0x446   :  { %p555_p5 = scmp.ne.s32.totalorder %s654_s4, %s554_s8  ;;  %p558_p6 = scmp.lt.u32.totalorder %s554_s8, %s654_s4 }
 0x448   :  { %p560_p7 = pnand %p558_p6, %p555_p5 }
 0x44a   :  { %563 = shalt.err (!%p560_p7)
}
 0x44b   :  { %s571_s13 = smov 128   ;;  %s572_s14 = smov 8  }
 0x44c   :  { %460 = dma.vmem_to_hbm [thread:$0]  %s455_s30, 256, %s654_s4, [#allocation3], %s571_s13, %s571_s13, %s572_s14  }
 0x44d   :  { %564 = dma.done.wait [#allocation3], 256  }
 0x44e   :  { %565 = vsyncadd [#allocation3], 4294967040 }
 0x44f   :  { %464 = vsyncpa [#allocation3], 1 }

</bundles_post_ra>
